<compile_context>
chip_gen: v5e
topology: v5e:2x2
jax: 0.10.0
libtpu: 0.0.40
codegen_flags: <defaults>
</compile_context>

<pallas_src>
import functools
import math

import jax
import jax.numpy as jnp
from jax.experimental import pallas as pl
from jax.experimental.pallas import tpu as pltpu


def _round_up(x: int, m: int) -> int:
    return (x + m - 1) // m * m


# ----------------------------------------------------------------------------
# Kernel
# ----------------------------------------------------------------------------
def _actor_kernel(x_ref, w1_ref, b1_ref, w2_ref, b2_ref, w3_ref, b3_ref, o_ref,
                  *, max_action: float, compute_dtype):
    # Cast x in-kernel (input stays f32 in HBM; no extra wrapper cast pass).
    x = x_ref[...].astype(compute_dtype)
    # Layer 1: Linear(obs -> 256) + ReLU   (bf16 operands, f32 accumulation)
    h1 = jnp.dot(x, w1_ref[...], preferred_element_type=jnp.float32)
    h1 = jnp.maximum(h1 + b1_ref[...], 0.0)
    # Layer 2: Linear(256 -> 256) + ReLU
    h2 = jnp.dot(h1.astype(compute_dtype), w2_ref[...],
                 preferred_element_type=jnp.float32)
    h2 = jnp.maximum(h2 + b2_ref[...], 0.0)
    # Layer 3: Linear(256 -> action_pad) + tanh, scaled by max_action
    h3 = jnp.dot(h2.astype(compute_dtype), w3_ref[...],
                 preferred_element_type=jnp.float32)
    o_ref[...] = (jnp.tanh(h3 + b3_ref[...]) * max_action).astype(o_ref.dtype)


# ----------------------------------------------------------------------------
# Parameter preparation (do this ONCE and reuse across forward calls)
# ----------------------------------------------------------------------------
def prepare_actor_params(params, compute_dtype=jnp.bfloat16):
    """Cast weights to compute dtype, biases to f32, and zero-pad the last
    layer's output dim up to a multiple of 128 lanes (lane-dense stores).
    Returns (prepared_params, action_dim)."""
    w1, b1, w2, b2, w3, b3 = params
    A = w3.shape[1]
    A_pad = _round_up(max(A, 128), 128)
    if A_pad != A:
        w3 = jnp.pad(w3, ((0, 0), (0, A_pad - A)))
        b3 = jnp.pad(b3, ((0, 0), (0, A_pad - A)))
    prepared = (w1.astype(compute_dtype), b1.astype(jnp.float32),
                w2.astype(compute_dtype), b2.astype(jnp.float32),
                w3.astype(compute_dtype), b3.astype(jnp.float32))
    return prepared, A


def _choose_tile_m(B: int) -> int:
    if B <= 256:
        # One block covering the whole batch (block dim == full array dim, so
        # no (8,128) divisibility requirement and no batch padding needed).
        return B
    # >= 2 grid steps so both v7x TensorCores get work; cap at 2048 rows/step
    # which keeps live VMEM (f32 h1/h2 + pipelined x/out tiles) comfortably
    # under v5e's scoped limit while amortizing per-step pipeline overhead.
    half = _round_up(pl.cdiv(B, 2), 256)
    return min(2048, half)


# ----------------------------------------------------------------------------
# Forward wrapper
# ----------------------------------------------------------------------------
def actor_forward(observations, params, max_action: float = 1.0, *,
                  action_dim: int | None = None,
                  tile_m: int | None = None,
                  compute_dtype=jnp.bfloat16,
                  out_dtype=jnp.bfloat16):
    """Fused 3-layer MLP actor forward pass as a single batch-tiled Pallas kernel.

    `params` may be raw f32 Linear params or the output of prepare_actor_params
    (preferred: prepare once, pass `action_dim` explicitly)."""
    w1, b1, w2, b2, w3, b3 = params
    # Lazily prepare if raw / unpadded params were passed.
    if w1.dtype != compute_dtype or (w3.shape[1] % 128) != 0:
        (w1, b1, w2, b2, w3, b3), inferred_a = prepare_actor_params(
            params, compute_dtype)
        if action_dim is None:
            action_dim = inferred_a
    if action_dim is None:
        action_dim = w3.shape[1]

    B, obs = observations.shape
    H = w1.shape[1]
    A_pad = w3.shape[1]

    if tile_m is None:
        tile_m = _choose_tile_m(B)
    grid = (pl.cdiv(B, tile_m),)

    kernel = functools.partial(_actor_kernel, max_action=float(max_action),
                               compute_dtype=compute_dtype)

    # Weights/biases: full-array blocks with constant index_maps -> loaded once,
    # VMEM-resident across all grid steps.
    def const(arr):
        return pl.BlockSpec(arr.shape, lambda i: (0, 0))

    flops = 2 * B * (obs * H + H * H + H * A_pad)
    bytes_accessed = (
        observations.size * observations.dtype.itemsize
        + sum(a.size * a.dtype.itemsize for a in (w1, b1, w2, b2, w3, b3))
        + B * A_pad * jnp.dtype(out_dtype).itemsize
    )
    cost = pl.CostEstimate(flops=flops,
                           transcendentals=B * A_pad,
                           bytes_accessed=bytes_accessed)

    out = pl.pallas_call(
        kernel,
        out_shape=jax.ShapeDtypeStruct((B, A_pad), out_dtype),
        grid=grid,
        in_specs=[
            pl.BlockSpec((tile_m, obs), lambda i: (i, 0)),   # x tile, pipelined
            const(w1), const(b1),
            const(w2), const(b2),
            const(w3), const(b3),
        ],
        out_specs=pl.BlockSpec((tile_m, A_pad), lambda i: (i, 0)),
        compiler_params=pltpu.CompilerParams(
            dimension_semantics=("parallel",),
            vmem_limit_bytes=32 * 1024 * 1024),
        cost_estimate=cost,
    )(observations.astype(jnp.float32), w1, b1, w2, b2, w3, b3)

    return out[:, :action_dim]


# ----------------------------------------------------------------------------
# Init + pure-JAX reference
# ----------------------------------------------------------------------------
def init_actor_params(key, observation_state_size: int, action_space_size: int):
    """Deterministic init mimicking torch.nn.Linear default (U[-1/sqrt(fan_in), +])."""
    dims = [(observation_state_size, 256), (256, 256), (256, action_space_size)]
    params = []
    for fan_in, fan_out in dims:
        kw, kb, key = jax.random.split(key, 3)
        bound = 1.0 / math.sqrt(fan_in)
        w = jax.random.uniform(kw, (fan_in, fan_out), jnp.float32, -bound, bound)
        b = jax.random.uniform(kb, (1, fan_out), jnp.float32, -bound, bound)
        params += [w, b]
    return tuple(params)


def actor_reference(observations, params, max_action: float = 1.0,
                    compute_dtype=jnp.bfloat16):
    """Pure-JAX reference mimicking the kernel's bf16-operand / f32-accum dots."""
    w1, b1, w2, b2, w3, b3 = params
    x = observations.astype(compute_dtype)
    w1 = w1.astype(compute_dtype)
    w2 = w2.astype(compute_dtype)
    w3 = w3.astype(compute_dtype)
    h = jnp.maximum(
        jnp.dot(x, w1, preferred_element_type=jnp.float32) + b1, 0.0)
    h = jnp.maximum(
        jnp.dot(h.astype(compute_dtype), w2,
                preferred_element_type=jnp.float32) + b2, 0.0)
    h = jnp.tanh(
        jnp.dot(h.astype(compute_dtype), w3,
                preferred_element_type=jnp.float32) + b3)
    return h * max_action


if __name__ == "__main__":
    key = jax.random.PRNGKey(0)
    k_obs, k_params = jax.random.split(key)

    batch = 8
    observation_state_size = 32
    action_space_size = 8
    max_action = 2.0

    observations = jax.random.normal(
        k_obs, (batch, observation_state_size), jnp.float32)
    params = init_actor_params(k_params, observation_state_size, action_space_size)

    # Prepare (cast + pad) the params once; reuse for every forward call.
    prepared_params, action_dim = prepare_actor_params(params)

    out = actor_forward(observations, prepared_params, max_action=max_action,
                        action_dim=action_dim)
    out = jax.block_until_ready(out)

    ref = actor_reference(observations, params, max_action=max_action)
    assert out.shape == (batch, action_space_size)
    assert jnp.allclose(out.astype(jnp.float32), ref, atol=3e-2, rtol=2e-2), \
        "mismatch vs reference"

    print("KERNEL_OK")
</pallas_src>

<mosaic_0001>
module attributes {stable_mosaic.version = 11 : i64} {
  func.func @_actor_kernel(%arg0: i32, %arg1: memref<8x32xf32, #tpu.memory_space<vmem>>, %arg2: memref<32x256xbf16, #tpu.memory_space<vmem>>, %arg3: memref<1x256xf32, #tpu.memory_space<vmem>>, %arg4: memref<256x256xbf16, #tpu.memory_space<vmem>>, %arg5: memref<1x256xf32, #tpu.memory_space<vmem>>, %arg6: memref<256x128xbf16, #tpu.memory_space<vmem>>, %arg7: memref<1x128xf32, #tpu.memory_space<vmem>>, %arg8: memref<8x128xbf16, #tpu.memory_space<vmem>>) attributes {dimension_semantics = [#tpu.dimension_semantics<parallel>], iteration_bounds = array<i64: 1>, scalar_prefetch = 0 : i64, scratch_operands = 0 : i64, tpu.core_type = #tpu.core_type<tc>, window_params = [{transform_indices = @transform_0, window_bounds = array<i64: 8, 32>}, {pipeline_mode = #tpu.pipeline_mode<synchronous>, transform_indices = @transform_1, window_bounds = array<i64: 32, 256>}, {pipeline_mode = #tpu.pipeline_mode<synchronous>, transform_indices = @transform_2, window_bounds = array<i64: 1, 256>}, {pipeline_mode = #tpu.pipeline_mode<synchronous>, transform_indices = @transform_3, window_bounds = array<i64: 256, 256>}, {pipeline_mode = #tpu.pipeline_mode<synchronous>, transform_indices = @transform_4, window_bounds = array<i64: 1, 256>}, {pipeline_mode = #tpu.pipeline_mode<synchronous>, transform_indices = @transform_5, window_bounds = array<i64: 256, 128>}, {pipeline_mode = #tpu.pipeline_mode<synchronous>, transform_indices = @transform_6, window_bounds = array<i64: 1, 128>}, {transform_indices = @transform_7, window_bounds = array<i64: 8, 128>}]} {
    %c0 = arith.constant 0 : index
    %c0_0 = arith.constant 0 : index
    %0 = vector.load %arg1[%c0, %c0_0] : memref<8x32xf32, #tpu.memory_space<vmem>>, vector<8x32xf32>
    %1 = arith.truncf %0 : vector<8x32xf32> to vector<8x32xbf16>
    %c0_1 = arith.constant 0 : index
    %c0_2 = arith.constant 0 : index
    %2 = vector.load %arg2[%c0_1, %c0_2] : memref<32x256xbf16, #tpu.memory_space<vmem>>, vector<32x256xbf16>
    %cst = arith.constant dense<0.000000e+00> : vector<8x256xf32>
    %3 = tpu.matmul %1, %2, %cst {dimension_numbers = #tpu.dot_dimension_numbers<[1], [0], [0], [1], [0, 0, 1, 1], [], []>} : vector<8x32xbf16>, vector<32x256xbf16>, vector<8x256xf32> -> vector<8x256xf32>
    %c0_3 = arith.constant 0 : index
    %c0_4 = arith.constant 0 : index
    %4 = vector.load %arg3[%c0_3, %c0_4] : memref<1x256xf32, #tpu.memory_space<vmem>>, vector<1x256xf32>
    %5 = vector.broadcast %4 : vector<1x256xf32> to vector<8x256xf32>
    %6 = arith.addf %3, %5 : vector<8x256xf32>
    %cst_5 = arith.constant 0.000000e+00 : f32
    %7 = vector.broadcast %cst_5 : f32 to vector<8x256xf32>
    %8 = arith.maximumf %6, %7 : vector<8x256xf32>
    %9 = arith.truncf %8 : vector<8x256xf32> to vector<8x256xbf16>
    %c0_6 = arith.constant 0 : index
    %c0_7 = arith.constant 0 : index
    %10 = vector.load %arg4[%c0_6, %c0_7] : memref<256x256xbf16, #tpu.memory_space<vmem>>, vector<256x256xbf16>
    %cst_8 = arith.constant dense<0.000000e+00> : vector<8x256xf32>
    %11 = tpu.matmul %9, %10, %cst_8 {dimension_numbers = #tpu.dot_dimension_numbers<[1], [0], [0], [1], [0, 0, 1, 1], [], []>} : vector<8x256xbf16>, vector<256x256xbf16>, vector<8x256xf32> -> vector<8x256xf32>
    %c0_9 = arith.constant 0 : index
    %c0_10 = arith.constant 0 : index
    %12 = vector.load %arg5[%c0_9, %c0_10] : memref<1x256xf32, #tpu.memory_space<vmem>>, vector<1x256xf32>
    %13 = vector.broadcast %12 : vector<1x256xf32> to vector<8x256xf32>
    %14 = arith.addf %11, %13 : vector<8x256xf32>
    %cst_11 = arith.constant 0.000000e+00 : f32
    %15 = vector.broadcast %cst_11 : f32 to vector<8x256xf32>
    %16 = arith.maximumf %14, %15 : vector<8x256xf32>
    %17 = arith.truncf %16 : vector<8x256xf32> to vector<8x256xbf16>
    %c0_12 = arith.constant 0 : index
    %c0_13 = arith.constant 0 : index
    %18 = vector.load %arg6[%c0_12, %c0_13] : memref<256x128xbf16, #tpu.memory_space<vmem>>, vector<256x128xbf16>
    %cst_14 = arith.constant dense<0.000000e+00> : vector<8x128xf32>
    %19 = tpu.matmul %17, %18, %cst_14 {dimension_numbers = #tpu.dot_dimension_numbers<[1], [0], [0], [1], [0, 0, 1, 1], [], []>} : vector<8x256xbf16>, vector<256x128xbf16>, vector<8x128xf32> -> vector<8x128xf32>
    %c0_15 = arith.constant 0 : index
    %c0_16 = arith.constant 0 : index
    %20 = vector.load %arg7[%c0_15, %c0_16] : memref<1x128xf32, #tpu.memory_space<vmem>>, vector<1x128xf32>
    %21 = vector.broadcast %20 : vector<1x128xf32> to vector<8x128xf32>
    %22 = arith.addf %19, %21 : vector<8x128xf32>
    %23 = math.tanh %22 : vector<8x128xf32>
    %cst_17 = arith.constant 2.000000e+00 : f32
    %24 = vector.broadcast %cst_17 : f32 to vector<8x128xf32>
    %25 = arith.mulf %23, %24 : vector<8x128xf32>
    %26 = arith.truncf %25 : vector<8x128xf32> to vector<8x128xbf16>
    %c0_18 = arith.constant 0 : index
    %c0_19 = arith.constant 0 : index
    %27 = vector.load %arg8[%c0_18, %c0_19] : memref<8x128xbf16, #tpu.memory_space<vmem>>, vector<8x128xbf16>
    tpu.vector_store %arg8[%c0_18, %c0_19], %26 {strides = array<i32>} : memref<8x128xbf16, #tpu.memory_space<vmem>>, vector<8x128xbf16>,
    return
  }
  func.func @transform_0(%arg0: i32) -> (i32, i32) {
    %c0_i32 = arith.constant 0 : i32
    %c0_i32_0 = arith.constant 0 : i32
    return %arg0, %c0_i32 : i32, i32
  }
  func.func @transform_1(%arg0: i32) -> (i32, i32) {
    %c0_i32 = arith.constant 0 : i32
    %c0_i32_0 = arith.constant 0 : i32
    %c0_i32_1 = arith.constant 0 : i32
    return %c0_i32, %c0_i32_0 : i32, i32
  }
  func.func @transform_2(%arg0: i32) -> (i32, i32) {
    %c0_i32 = arith.constant 0 : i32
    %c0_i32_0 = arith.constant 0 : i32
    %c0_i32_1 = arith.constant 0 : i32
    return %c0_i32, %c0_i32_0 : i32, i32
  }
  func.func @transform_3(%arg0: i32) -> (i32, i32) {
    %c0_i32 = arith.constant 0 : i32
    %c0_i32_0 = arith.constant 0 : i32
    %c0_i32_1 = arith.constant 0 : i32
    return %c0_i32, %c0_i32_0 : i32, i32
  }
  func.func @transform_4(%arg0: i32) -> (i32, i32) {
    %c0_i32 = arith.constant 0 : i32
    %c0_i32_0 = arith.constant 0 : i32
    %c0_i32_1 = arith.constant 0 : i32
    return %c0_i32, %c0_i32_0 : i32, i32
  }
  func.func @transform_5(%arg0: i32) -> (i32, i32) {
    %c0_i32 = arith.constant 0 : i32
    %c0_i32_0 = arith.constant 0 : i32
    %c0_i32_1 = arith.constant 0 : i32
    return %c0_i32, %c0_i32_0 : i32, i32
  }
  func.func @transform_6(%arg0: i32) -> (i32, i32) {
    %c0_i32 = arith.constant 0 : i32
    %c0_i32_0 = arith.constant 0 : i32
    %c0_i32_1 = arith.constant 0 : i32
    return %c0_i32, %c0_i32_0 : i32, i32
  }
  func.func @transform_7(%arg0: i32) -> (i32, i32) {
    %c0_i32 = arith.constant 0 : i32
    %c0_i32_0 = arith.constant 0 : i32
    return %arg0, %c0_i32 : i32, i32
  }
}

</mosaic_0001>

<bundles_post_ra>
// kernel: tpu_custom_call.1
= control target key start
LH: loop header
LB: loop body
LE: loop exit
PB: predicated region body
PF: predicated region fallthrough
CT: control target
= control target key end

     0   :  { %12 = vsyncpa [#allocation3], 0  ;;  %s1106_s0 = inlined_call_operand.hbm [shape: f32[8,32], index: 0, kind: input, shape index: {}]   ;;  %s1107_s1 = inlined_call_operand.hbm [shape: bf16[32,256], index: 1, kind: input, shape index: {}]   ;;  %s1108_s2 = inlined_call_operand.hbm [shape: f32[1,256], index: 2, kind: input, shape index: {}]   ;;  %s1109_s3 = inlined_call_operand.hbm [shape: bf16[256,256], index: 3, kind: input, shape index: {}]   ;;  %s1110_s4 = inlined_call_operand.vmem [shape: f32[1,256], index: 4, kind: input, shape index: {}]   ;;  %s1111_s5 = inlined_call_operand.hbm [shape: bf16[256,128], index: 5, kind: input, shape index: {}]   ;;  %s1112_s6 = inlined_call_operand.vmem [shape: f32[1,128], index: 6, kind: input, shape index: {}]   ;;  %s1113_s7 = inlined_call_operand.hbm [shape: bf16[8,128], index: 7, kind: output, shape index: {}]  }
   0x1   :  { %13 = vsyncpa [#allocation6], 0 }
   0x2   :  { %14 = vsyncpa [#allocation9], 0  ;;  %s31_s26 = sshll.u32 %s1107_s1, 4  ;;  %s32_s26 = int_to_ptr.hbm [resolvable:$true] %s31_s26 }
   0x3   :  { %15 = vsyncpa [#allocation4], 0  ;;  %s1030_s27 = smov [#allocation5]   ;;  %s55_s8 = sshll.u32 %s1109_s3, 4  ;;  %s56_s8 = int_to_ptr.hbm [resolvable:$true] %s55_s8 }
   0x4   :  { %s33_s28 = sshll.u32 %s1030_s27, 4  ;;  %s1031_s9 = smov 128   ;;  %s34_s28 = int_to_ptr.vmem [resolvable:$true] %s33_s28 }
   0x5   :  { %s1032_s10 = smov 8   ;;  %s1033_s11 = smov [#allocation8]  }
   0x6   :  { %39 = dma.hbm_to_vmem [thread:$0]  %s32_s26, 512, %s34_s28, [#allocation6], %s1031_s9, %s1031_s9, %s1032_s10  }
   0x7   :  { %s57_s12 = sshll.u32 %s1033_s11, 4  ;;  %s21_s15 = sshll.u32 %s1106_s0, 4  ;;  %s58_s12 = int_to_ptr.vmem [resolvable:$true] %s57_s12  ;;  %s22_s15 = int_to_ptr.hbm [resolvable:$true] %s21_s15 }
   0x8   :  { %63 = dma.hbm_to_vmem [thread:$0]  %s56_s8, 4096, %s58_s12, [#allocation9], %s1031_s9, %s1031_s9, %s1032_s10  }
   0x9   :  { %s45_s17 = sshll.u32 %s1108_s2, 4  ;;  %s1034_s18 = smov [#allocation2]   ;;  %s46_s17 = int_to_ptr.hbm [resolvable:$true] %s45_s17 }
   0xa   :  { %s23_s19 = sshll.u32 %s1034_s18, 4  ;;  %s1035_s3 = smov [#allocation7]   ;;  %s24_s19 = int_to_ptr.vmem [resolvable:$true] %s23_s19 }
   0xb   :  { %26 = dma.hbm_to_vmem [thread:$0]  %s22_s15, 128, %s24_s19, [#allocation3]  }
   0xc   :  { %s47_s20 = sshll.u32 %s1035_s3, 4  ;;  %s70_s23 = sshll.u32 %s1111_s5, 4  ;;  %s48_s20 = int_to_ptr.vmem [resolvable:$true] %s47_s20  ;;  %s71_s23 = int_to_ptr.hbm [resolvable:$true] %s70_s23 }
   0xd   :  { %50 = dma.hbm_to_vmem [thread:$0]  %s46_s17, 32, %s48_s20, [#allocation6]  }
   0xe   :  { %s1036_s0 = smov [#allocation10]   ;;  %s1037_s25 = smov 64  }
   0xf   :  { %s72_s24 = sshll.u32 %s1036_s0, 4  ;;  %s1038_s26 = smov 4   ;;  %s73_s24 = int_to_ptr.vmem [resolvable:$true] %s72_s24 }
  0x10   :  { %78 = dma.hbm_to_vmem [thread:$0]  %s71_s23, 2048, %s73_s24, [#allocation9], %s1037_s25, %s1037_s25, %s1038_s26  }
  0x11   :  { %1022 = dma.done.wait [#allocation3], 128  }
  0x12   :  { %1023 = vsyncadd [#allocation3], 4294967168 }
  0x13   :  { %1024 = dma.done.wait [#allocation6], 544  }
  0x14   :  { %1025 = vsyncadd [#allocation6], 4294966752 }
  0x15   :  { %1026 = dma.done.wait [#allocation9], 6144  }
  0x16   :  { %1027 = vsyncadd [#allocation9], 4294961152  ;;  %v613_v0 = vld [vmem:[#allocation5 + $0x10] sm:$0xf]  ;;  %v816_v1 = vld [vmem:[#allocation5 + $0x14] sm:$0xf0] }
  0x17   :  { %v815_v2 = vld [vmem:[#allocation5 + $0x14] sm:$0xf]  ;;  %v614_v3 = vor.u32 %v816_v1, %v613_v0  ;;  %v615_v4 = vld [vmem:[#allocation5 + $0x18] sm:$0xf0]  ;;  %v605_v5 = vld [vmem:[#allocation5] sm:$0xf] }
  0x18   :  { %v814_v6 = vld [vmem:[#allocation5 + $0x4] sm:$0xf0]  ;;  %v618_v7 = vor.u32 %v815_v2, %v615_v4  ;;  %v813_v8 = vld [vmem:[#allocation5 + $0x4] sm:$0xf]  ;;  %v607_v9 = vld [vmem:[#allocation5 + $0x8] sm:$0xf0] }
  0x19   :  { %v102_v10 = vld [vmem:[#allocation2] sm:$0xff]  ;;  %vm134_vm0 = vcmask 261120   ;;  %144 = vmatpush.bf16.msra.mxu0 %v614_v3  ;;  %v606_v11 = vor.u32 %v814_v6, %v605_v5  ;;  %v679_v12 = vld [vmem:[#allocation8 + $0x70] sm:$0xf]  ;;  %v610_v15 = vor.u32 %v813_v8, %v607_v9  ;;  %v671_v24 = vld [vmem:[#allocation8 + $0x60] sm:$0xf] }
  0x1a   :  { %v832_v13 = vld [vmem:[#allocation8 + $0x74] sm:$0xf0]  ;;  %v743_v14 = vld [vmem:[#allocation8 + $0xf0] sm:$0xf]  ;;  %157 = vmatpush.bf16.msra.mxu1 %v618_v7  ;;  %v831_v18 = vld [vmem:[#allocation8 + $0x74] sm:$0xf]  ;;  %v103_v25 = vpack.c.bf16 %v102_v10, %v102_v10 }
  0x1b   :  { %v680_v16 = vor.u32 %v832_v13, %v679_v12  ;;  %v848_v17 = vld [vmem:[#allocation8 + $0xf4] sm:$0xf0]  ;;  %v681_v19 = vld [vmem:[#allocation8 + $0x78] sm:$0xf0]  ;;  %v847_v22 = vld [vmem:[#allocation8 + $0xf4] sm:$0xf] }
  0x1c   :  { %v744_v20 = vor.u32 %v848_v17, %v743_v14  ;;  %v684_v21 = vor.u32 %v831_v18, %v681_v19  ;;  %v745_v23 = vld [vmem:[#allocation8 + $0xf8] sm:$0xf0]  ;;  %v830_v27 = vld [vmem:[#allocation8 + $0x64] sm:$0xf0]  ;;  %v735_v28 = vld [vmem:[#allocation8 + $0xe0] sm:$0xf] }
  0x1d   :  { %366 = vmatpush.bf16.msra.mxu2 %v680_v16  ;;  %v748_v26 = vor.u32 %v847_v22, %v745_v23  ;;  %v846_v29 = vld [vmem:[#allocation8 + $0xe4] sm:$0xf0]  ;;  %145 = vmatpush.bf16.msra.mxu0 %v606_v11  ;;  %v672_v30 = vor.u32 %v830_v27, %v671_v24  ;;  %v829_v32 = vld [vmem:[#allocation8 + $0x64] sm:$0xf]  ;;  %v673_v33 = vld [vmem:[#allocation8 + $0x68] sm:$0xf0] }
  0x1e   :  { %379 = vmatpush.bf16.msra.mxu3 %v744_v20  ;;  %v736_v31 = vor.u32 %v846_v29, %v735_v28  ;;  %v845_v34 = vld [vmem:[#allocation8 + $0xe4] sm:$0xf]  ;;  %158 = vmatpush.bf16.msra.mxu1 %v610_v15  ;;  %v676_v35 = vor.u32 %v829_v32, %v673_v33  ;;  %v737_v36 = vld [vmem:[#allocation8 + $0xe8] sm:$0xf0]  ;;  %v663_v37 = vld [vmem:[#allocation8 + $0x50] sm:$0xf] }
  0x1f   :  { %v828_v38 = vld [vmem:[#allocation8 + $0x54] sm:$0xf0]  ;;  %v740_v39 = vor.u32 %v845_v34, %v737_v36  ;;  %v727_v40 = vld [vmem:[#allocation8 + $0xd0] sm:$0xf]  ;;  %v827_v42 = vld [vmem:[#allocation8 + $0x54] sm:$0xf] }
  0x20   :  { %v844_v41 = vld [vmem:[#allocation8 + $0xd4] sm:$0xf0]  ;;  %619 = vmatmul.msk.bf16.vlgmr.msra.gmra.mxu0 %vm134_vm0, %v103_v25  ;;  %v664_v43 = vor.u32 %v828_v38, %v663_v37  ;;  %v665_v44 = vld [vmem:[#allocation8 + $0x58] sm:$0xf0]  ;;  %v843_v45 = vld [vmem:[#allocation8 + $0xd4] sm:$0xf] }
  0x21   :  { %392 = vmatpush.bf16.msrb.mxu0 %v684_v21  ;;  %367 = vmatpush.bf16.msra.mxu2 %v672_v30  ;;  %v729_v46 = vld [vmem:[#allocation8 + $0xd8] sm:$0xf0]  ;;  %v728_v47 = vor.u32 %v844_v41, %v727_v40  ;;  %v655_v48 = vld [vmem:[#allocation8 + $0x40] sm:$0xf]  ;;  %v826_v49 = vld [vmem:[#allocation8 + $0x44] sm:$0xf0]  ;;  %v668_v50 = vor.u32 %v827_v42, %v665_v44 }
  0x22   :  { %405 = vmatpush.bf16.msrb.mxu1 %v748_v26  ;;  %380 = vmatpush.bf16.msra.mxu3 %v736_v31  ;;  %v719_v51 = vld [vmem:[#allocation8 + $0xc0] sm:$0xf]  ;;  %v842_v52 = vld [vmem:[#allocation8 + $0xc4] sm:$0xf0]  ;;  %v732_v53 = vor.u32 %v843_v45, %v729_v46  ;;  %v825_v54 = vld [vmem:[#allocation8 + $0x44] sm:$0xf]  ;;  %v656_v56 = vor.u32 %v826_v49, %v655_v48 }
  0x23   :  { %620 = vmatmul.msk.bf16.vlgmr.msra.gmra.mxu1 %vm134_vm0, %v103_v25  ;;  %v657_v55 = vld [vmem:[#allocation8 + $0x48] sm:$0xf0]  ;;  %v841_v57 = vld [vmem:[#allocation8 + $0xc4] sm:$0xf]  ;;  %v720_v59 = vor.u32 %v842_v52, %v719_v51  ;;  %v647_v60 = vld [vmem:[#allocation8 + $0x30] sm:$0xf] }
  0x24   :  { %v721_v58 = vld [vmem:[#allocation8 + $0xc8] sm:$0xf0]  ;;  %v824_v61 = vld [vmem:[#allocation8 + $0x34] sm:$0xf0]  ;;  %v660_v62 = vor.u32 %v825_v54, %v657_v55  ;;  %v711_v63 = vld [vmem:[#allocation8 + $0xb0] sm:$0xf] }
  0x25   :  { %393 = vmatpush.bf16.msrb.mxu0 %v676_v35  ;;  %368 = vmatpush.bf16.msra.mxu2 %v664_v43  ;;  %v840_v0 = vld [vmem:[#allocation8 + $0xb4] sm:$0xf0]  ;;  %v724_v1 = vor.u32 %v841_v57, %v721_v58  ;;  %v823_v2 = vld [vmem:[#allocation8 + $0x34] sm:$0xf]  ;;  %v649_v3 = vld [vmem:[#allocation8 + $0x38] sm:$0xf0]  ;;  %v648_v4 = vor.u32 %v824_v61, %v647_v60 }
  0x26   :  { %406 = vmatpush.bf16.msrb.mxu1 %v740_v39  ;;  %381 = vmatpush.bf16.msra.mxu3 %v728_v47  ;;  %v839_v5 = vld [vmem:[#allocation8 + $0xb4] sm:$0xf]  ;;  %v713_v6 = vld [vmem:[#allocation8 + $0xb8] sm:$0xf0]  ;;  %v712_v7 = vor.u32 %v840_v0, %v711_v63  ;;  %v639_v8 = vld [vmem:[#allocation8 + $0x20] sm:$0xf]  ;;  %v652_v10 = vor.u32 %v823_v2, %v649_v3 }
  0x27   :  { %v822_v9 = vld [vmem:[#allocation8 + $0x24] sm:$0xf0]  ;;  %v703_v11 = vld [vmem:[#allocation8 + $0xa0] sm:$0xf]  ;;  %v716_v13 = vor.u32 %v839_v5, %v713_v6  ;;  %v821_v14 = vld [vmem:[#allocation8 + $0x24] sm:$0xf] }
  0x28   :  { %v838_v12 = vld [vmem:[#allocation8 + $0xa4] sm:$0xf0]  ;;  %v641_v15 = vld [vmem:[#allocation8 + $0x28] sm:$0xf0]  ;;  %v640_v16 = vor.u32 %v822_v9, %v639_v8  ;;  %v837_v17 = vld [vmem:[#allocation8 + $0xa4] sm:$0xf] }
  0x29   :  { %394 = vmatpush.bf16.msrb.mxu0 %v668_v50  ;;  %369 = vmatpush.bf16.msra.mxu2 %v656_v56  ;;  %v705_v18 = vld [vmem:[#allocation8 + $0xa8] sm:$0xf0]  ;;  %v704_v19 = vor.u32 %v838_v12, %v703_v11  ;;  %v644_v20 = vor.u32 %v821_v14, %v641_v15  ;;  %v631_v22 = vld [vmem:[#allocation8 + $0x10] sm:$0xf]  ;;  %v820_v23 = vld [vmem:[#allocation8 + $0x14] sm:$0xf0] }
  0x2a   :  { %407 = vmatpush.bf16.msrb.mxu1 %v732_v53  ;;  %382 = vmatpush.bf16.msra.mxu3 %v720_v59  ;;  %v708_v21 = vor.u32 %v837_v17, %v705_v18  ;;  %v695_v24 = vld [vmem:[#allocation8 + $0x90] sm:$0xf]  ;;  %v632_v25 = vor.u32 %v820_v23, %v631_v22  ;;  %v836_v26 = vld [vmem:[#allocation8 + $0x94] sm:$0xf0]  ;;  %v819_v27 = vld [vmem:[#allocation8 + $0x14] sm:$0xf] }
  0x2b   :  { %v633_v28 = vld [vmem:[#allocation8 + $0x18] sm:$0xf0]  ;;  %v696_v29 = vor.u32 %v836_v26, %v695_v24  ;;  %v835_v31 = vld [vmem:[#allocation8 + $0x94] sm:$0xf]  ;;  %v623_v34 = vld [vmem:[#allocation8] sm:$0xf] }
  0x2c   :  { %v636_v30 = vor.u32 %v819_v27, %v633_v28  ;;  %v697_v32 = vld [vmem:[#allocation8 + $0x98] sm:$0xf0]  ;;  %v818_v35 = vld [vmem:[#allocation8 + $0x4] sm:$0xf0]  ;;  %v687_v36 = vld [vmem:[#allocation8 + $0x80] sm:$0xf] }
  0x2d   :  { %395 = vmatpush.bf16.msrb.mxu0 %v660_v62  ;;  %370 = vmatpush.bf16.msra.mxu2 %v648_v4  ;;  %v700_v33 = vor.u32 %v835_v31, %v697_v32  ;;  %v624_v37 = vor.u32 %v818_v35, %v623_v34  ;;  %v834_v38 = vld [vmem:[#allocation8 + $0x84] sm:$0xf0]  ;;  %v817_v39 = vld [vmem:[#allocation8 + $0x4] sm:$0xf]  ;;  %v625_v40 = vld [vmem:[#allocation8 + $0x8] sm:$0xf0] }
  0x2e   :  { %408 = vmatpush.bf16.msrb.mxu1 %v724_v1  ;;  %383 = vmatpush.bf16.msra.mxu3 %v712_v7  ;;  %v688_v41 = vor.u32 %v834_v38, %v687_v36  ;;  %v628_v42 = vor.u32 %v817_v39, %v625_v40  ;;  %v833_v43 = vld [vmem:[#allocation8 + $0x84] sm:$0xf]  ;;  %v689_v44 = vld [vmem:[#allocation8 + $0x88] sm:$0xf0]  ;;  %v864_v46 = vld [vmem:[#allocation10 + $0x78] sm:$0xff]  ;;  %s1039_s28 = smov [#allocation11]  }
  0x2f   :  { %v692_v45 = vor.u32 %v833_v43, %v689_v44  ;;  %v856_v47 = vld [vmem:[#allocation10 + $0x38] sm:$0xff]  ;;  %v863_v48 = vld [vmem:[#allocation10 + $0x70] sm:$0xff]  ;;  %v862_v50 = vld [vmem:[#allocation10 + $0x68] sm:$0xff]  ;;  %s589_s29 = sshll.u32 %s1039_s28, 4  ;;  %s591_s9 = sshll.u32 %s1113_s7, 4  ;;  %s590_s29 = int_to_ptr.vmem [resolvable:$true] %s589_s29  ;;  %s592_s9 = int_to_ptr.hbm [resolvable:$true] %s591_s9 }
  0x30   :  { %v855_v49 = vld [vmem:[#allocation10 + $0x30] sm:$0xff]  ;;  %v854_v51 = vld [vmem:[#allocation10 + $0x28] sm:$0xff]  ;;  %v861_v52 = vld [vmem:[#allocation10 + $0x60] sm:$0xff] }
  0x31   :  { %396 = vmatpush.bf16.msrb.mxu0 %v652_v10  ;;  %371 = vmatpush.bf16.msra.mxu2 %v640_v16  ;;  %v853_v53 = vld [vmem:[#allocation10 + $0x20] sm:$0xff]  ;;  %v860_v54 = vld [vmem:[#allocation10 + $0x58] sm:$0xff]  ;;  %v859_v56 = vld [vmem:[#allocation10 + $0x50] sm:$0xff] }
  0x32   :  { %409 = vmatpush.bf16.msrb.mxu1 %v716_v13  ;;  %384 = vmatpush.bf16.msra.mxu3 %v704_v19  ;;  %v108_v55 = vld [vmem:[#allocation7] sm:$0x3]  ;;  %v858_v6 = vld [vmem:[#allocation10 + $0x48] sm:$0xff]  ;;  %v851_v7 = vld [vmem:[#allocation10 + $0x10] sm:$0xff] }
  0x33   :  { %v110_v57 = vperm.slane %v108_v55, 0  ;;  %v111_v58 = vperm.slane %v108_v55, 1  ;;  %v852_v5 = vld [vmem:[#allocation10 + $0x18] sm:$0xff]  ;;  %v857_v8 = vld [vmem:[#allocation10 + $0x40] sm:$0xff]  ;;  %v850_v9 = vld [vmem:[#allocation10 + $0x8] sm:$0xff] }
  0x34   :  { %v849_v10 = vld [vmem:[#allocation10] sm:$0xff]  ;;  %v200_v11 = vld [vmem:[%s1110_s4] sm:$0x3] }
  0x35   :  { %397 = vmatpush.bf16.msrb.mxu0 %v644_v20  ;;  %372 = vmatpush.bf16.msra.mxu2 %v632_v25  ;;  %v203_v12 = vperm.slane %v200_v11, 1  ;;  %v202_v17 = vperm.slane %v200_v11, 0  ;;  %v875_v31 = vld [vmem:[%s1112_s6] ss:$0 sm:$0xff] }
  0x36   :  { %410 = vmatpush.bf16.msrb.mxu1 %v708_v21  ;;  %385 = vmatpush.bf16.msra.mxu3 %v696_v29 }
  0x39   :  { %398 = vmatpush.bf16.msrb.mxu0 %v636_v30  ;;  %373 = vmatpush.bf16.msra.mxu2 %v624_v37 }
  0x3a   :  { %411 = vmatpush.bf16.msrb.mxu1 %v700_v33  ;;  %386 = vmatpush.bf16.msra.mxu3 %v688_v41 }
  0x3d   :  { %399 = vmatpush.bf16.msrb.mxu0 %v628_v42  ;;  %554 = vmatpush.bf16.msrb.mxu2 %v856_v47 }
  0x3e   :  { %412 = vmatpush.bf16.msrb.mxu1 %v692_v45  ;;  %567 = vmatpush.bf16.msrb.mxu3 %v864_v46 }
  0x41   :  { %555 = vmatpush.bf16.msrb.mxu2 %v855_v49 }
  0x42   :  { %568 = vmatpush.bf16.msrb.mxu3 %v863_v48 }
  0x45   :  { %556 = vmatpush.bf16.msrb.mxu2 %v854_v51 }
  0x46   :  { %569 = vmatpush.bf16.msrb.mxu3 %v862_v50 }
  0x49   :  { %557 = vmatpush.bf16.msrb.mxu2 %v853_v53 }
  0x4a   :  { %570 = vmatpush.bf16.msrb.mxu3 %v861_v52 }
  0x4d   :  { %558 = vmatpush.bf16.msrb.mxu2 %v852_v5 }
  0x4e   :  { %571 = vmatpush.bf16.msrb.mxu3 %v860_v54 }
  0x51   :  { %559 = vmatpush.bf16.msrb.mxu2 %v851_v7 }
  0x52   :  { %572 = vmatpush.bf16.msrb.mxu3 %v859_v56 }
  0x55   :  { %560 = vmatpush.bf16.msrb.mxu2 %v850_v9 }
  0x56   :  { %573 = vmatpush.bf16.msrb.mxu3 %v858_v6 }
  0x59   :  { %561 = vmatpush.bf16.msrb.mxu2 %v849_v10 }
  0x5a   :  { %574 = vmatpush.bf16.msrb.mxu3 %v857_v8 }
  0x9d   :  { %v147_v59 = vpop.f32.mrf.mxu0 }
  0x9e   :  { %v148_v60 = vadd.f32 %v147_v59, %v110_v57 }
  0xa0   :  { %v160_v61 = vpop.f32.mrf.mxu1  ;;  %v164_v63 = vmax.f32 %v148_v60, 0.0 }
  0xa1   :  { %v161_v62 = vadd.f32 %v160_v61, %v111_v58 }
  0xa2   :  { %v166_v1 = vpack.c.bf16 %v164_v63, %v164_v63 }
  0xa3   :  { %v165_v0 = vmax.f32 %v161_v62, 0.0 }
  0xa4   :  { %374 = vmatmul.bf16.vlgmr.msra.gmra.mxu2 %v166_v1  ;;  %400 = vmatmul.bf16.vlgmr.msrb.gmra.mxu0 %v166_v1 }
  0xa5   :  { %v167_v2 = vpack.c.bf16 %v165_v0, %v165_v0  ;;  %v149_v3 = vpop.f32.mrf.mxu0 }
  0xa7   :  { %387 = vmatmul.bf16.vlgmr.msra.gmra.mxu3 %v167_v2  ;;  %413 = vmatmul.bf16.vlgmr.msrb.gmra.mxu1 %v167_v2 }
  0xa8   :  { %v162_v4 = vpop.f32.mrf.mxu1 }
 0x121   :  { %v401_v13 = vpop.f32.mrf.mxu0 }
 0x122   :  { %v402_v14 = vadd.f32 %v401_v13, %v203_v12 }
 0x124   :  { %v414_v15 = vpop.f32.mrf.mxu1 }
 0x125   :  { %v415_v16 = vadd.f32 %v414_v15, %v402_v14 }
 0x127   :  { %v419_v18 = vmax.f32 %v415_v16, 0.0  ;;  %v375_v19 = vpop.f32.mrf.mxu2 }
 0x128   :  { %v376_v21 = vadd.f32 %v375_v19, %v202_v17 }
 0x129   :  { %v421_v20 = vpack.c.bf16 %v419_v18, %v419_v18  ;;  %v403_v23 = vpop.f32.mrf.mxu0 }
 0x12a   :  { %v388_v22 = vpop.f32.mrf.mxu3 }
 0x12b   :  { %v389_v24 = vadd.f32 %v388_v22, %v376_v21  ;;  %575 = vmatmul.bf16.vlgmr.msrb.gmra.mxu3 %v421_v20 }
 0x12c   :  { %v416_v25 = vpop.f32.mrf.mxu1 }
 0x12d   :  { %v418_v26 = vmax.f32 %v389_v24, 0.0 }
 0x12f   :  { %v420_v27 = vpack.c.bf16 %v418_v26, %v418_v26  ;;  %v377_v28 = vpop.f32.mrf.mxu2 }
 0x131   :  { %562 = vmatmul.bf16.vlgmr.msrb.gmra.mxu2 %v420_v27 }
 0x132   :  { %v390_v29 = vpop.f32.mrf.mxu3 }
 0x1ae   :  { %v576_v30 = vpop.f32.mrf.mxu3 }
 0x1b4   :  { %v563_v32 = vpop.f32.mrf.mxu2 }
 0x1b5   :  { %v564_v33 = vadd.f32 %v875_v31, %v563_v32 }
 0x1b6   :  { %v578_v34 = vpop.f32.mrf.mxu3 }
 0x1b7   :  { %v577_v35 = vadd.f32 %v576_v30, %v564_v33 }
 0x1b9   :  { %876 = vtanh.f32 %v577_v35 }
 0x1bc   :  { %v565_v36 = vpop.f32.mrf.mxu2 }
 0x1bf   :  { %v877_v37 = vpop.eup %876 }
 0x1c0   :  { %v581_v38 = vmul.f32 2.0, %v877_v37 }
 0x1c2   :  { %v582_v39 = vpack.c.bf16 %v581_v38, %v581_v38 }
 0x1c4   :  { %583 = vst [vmem:[#allocation11] sm:$0xf] %v582_v39 }
 0x1c5   :  { %594 = dma.vmem_to_hbm [thread:$0]  %s590_s29, 64, %s592_s9, [#allocation4]  }
 0x1c6   :  { %1028 = dma.done.wait [#allocation4], 64  }
 0x1c7   :  { %1029 = vsyncadd [#allocation4], 4294967232 }
 0x1c8   :  { %599 = vsyncpa [#allocation3], 1 }
 0x1c9   :  { %600 = vsyncpa [#allocation6], 1 }
 0x1ca   :  { %601 = vsyncpa [#allocation9], 1 }
 0x1cb   :  { %602 = vsyncpa [#allocation4], 1 }

</bundles_post_ra>
